<compile_context>
chip_gen: v6e
topology: v6e:2x2x1
jax: 0.10.0
libtpu: 0.0.40
codegen_flags: <defaults>
</compile_context>

<pallas_src>
import math

import jax
import jax.numpy as jnp
from jax.experimental import pallas as pl
from jax.experimental.pallas import tpu as pltpu

DELTA = 10000000000.0   # module default delta
EPS = 1e-10
PI = math.pi
_LANE = 128
_SUB = 8
_MAX_TILE_ROWS = 32768        # cap on rows per grid step
_MAX_BLOCK_CLASSES = 2048     # classes per grid step before the C-split kicks in


def _round_up(x, m):
    return (x + m - 1) // m * m


def _vmem_limit_bytes():
    """Generation-aware scoped-VMEM limit: 3/4 of physical per-core VMEM."""
    try:
        phys = int(pltpu.get_tpu_info().vmem_capacity_bytes)
    except Exception:   # no TPU info available -> assume the smallest (v7x, 64 MiB)
        phys = 64 * 1024 * 1024
    return int((phys * 3) // 4)


def _pick_tiles(n, c, itemsize, vmem_limit, max_tile_rows=None, max_block_classes=None):
    """Pick (rows per grid step, classes per grid step) from the VMEM budget."""
    cap_c = _MAX_BLOCK_CLASSES if max_block_classes is None else max_block_classes
    if c <= cap_c:
        c_tile = c                                   # single class block (fast path)
    else:
        c_tile = max(_SUB, (cap_c // _SUB) * _SUB)   # split blocks: multiple of 8
    c_phys = _round_up(c_tile, _SUB)                 # sublane padding of the class dim

    # Physical bytes per row of tile_n:
    #   2 double-buffered logits blocks      : 2 * c_phys * itemsize
    #   2 double-buffered targets row blocks : 2 * 8 * 4   (sublane-padded int32)
    #   ~5 f32 (c_tile, T) temporaries       : 5 * c_phys * 4
    #   accumulators / ce / loss rows        : ~6 * 8 * 4
    bytes_per_row = 2 * c_phys * itemsize + 2 * _SUB * 4 + 5 * c_phys * 4 + 6 * _SUB * 4
    budget = int(vmem_limit * 0.7)
    rows = budget // bytes_per_row
    rows = max(_LANE, (rows // _LANE) * _LANE)
    rows = min(rows, _MAX_TILE_ROWS)
    rows = min(rows, _round_up(n, _LANE))
    if max_tile_rows is not None:
        rows = min(rows, max(_LANE, (max_tile_rows // _LANE) * _LANE))
    return int(rows), int(c_tile)


def _make_kernel(n, c, c_tile, tile_n, nblk_c, delta):
    k = tile_n // _LANE
    need_cls_mask = (nblk_c * c_tile) != c     # padded class rows in last class block
    single_c = (nblk_c == 1)

    def finalize(ce_row, out_ref):
        # Single relayout: (1, tile_n) -> lane-dense (tile_n//128, 128) for the chain.
        ce = ce_row.reshape(k, _LANE)
        p = jnp.clip(jnp.exp(-ce), EPS, 1.0 - EPS)
        p_pi = p * PI
        term1 = jnp.sin(p_pi) / p_pi
        pd = p * delta
        pd_pi = pd * PI
        # keep the reference grouping: exp(-delta*p) * (sin(.)/(.)); do not reorder.
        term2 = jnp.exp(-pd) * (jnp.sin(pd_pi) * pl.reciprocal(pd_pi, approx=True))
        loss = (term1 - term2) * ce * 10.0                           # (k, 128)
        out_ref[...] = jnp.sum(loss, axis=0, keepdims=True)[None]    # (1, 1, 128)

    def row_valid(i):
        lane = jax.lax.broadcasted_iota(jnp.int32, (1, tile_n), 1)
        return (i * tile_n + lane) < n

    if single_c:
        def kernel(x_ref, t_ref, out_ref):
            i = pl.program_id(0)
            xb = x_ref[...].astype(jnp.float32)                       # (C, T)
            tg = t_ref[...]                                           # (1, T) int32
            cls = jax.lax.broadcasted_iota(jnp.int32, (c_tile, tile_n), 0)
            m = jnp.max(xb, axis=0, keepdims=True)                    # (1, T)
            l = jnp.sum(jnp.exp(xb - m), axis=0, keepdims=True)       # (1, T)
            t = jnp.sum(jnp.where(cls == tg, xb, 0.0), axis=0, keepdims=True)
            # rows past the true batch size (padding / partial last tile) -> ce = 0
            ce = jnp.where(row_valid(i), m + jnp.log(l) - t, 0.0)
            finalize(ce, out_ref)
        return kernel

    def kernel(x_ref, t_ref, out_ref, m_scr, l_scr, t_scr):
        i = pl.program_id(0)
        cj = pl.program_id(1)

        @pl.when(cj == 0)
        def _():
            m_scr[...] = jnp.full(m_scr.shape, -jnp.inf, dtype=m_scr.dtype)
            l_scr[...] = jnp.zeros(l_scr.shape, dtype=l_scr.dtype)
            t_scr[...] = jnp.zeros(t_scr.shape, dtype=t_scr.dtype)

        xb = x_ref[...].astype(jnp.float32)                           # (c_tile, T)
        tg = t_ref[...]                                               # (1, T) int32
        cls = jax.lax.broadcasted_iota(jnp.int32, (c_tile, tile_n), 0) + cj * c_tile
        if need_cls_mask:
            xb = jnp.where(cls < c, xb, -jnp.inf)                     # padded classes

        m_old = m_scr[...]
        m_new = jnp.maximum(m_old, jnp.max(xb, axis=0, keepdims=True))
        scale = jnp.where(m_old > -jnp.inf, jnp.exp(m_old - m_new), 0.0)
        l_blk = jnp.sum(jnp.exp(xb - m_new), axis=0, keepdims=True)
        l_scr[...] = l_scr[...] * scale + l_blk
        t_scr[...] = t_scr[...] + jnp.sum(jnp.where(cls == tg, xb, 0.0),
                                          axis=0, keepdims=True)
        m_scr[...] = m_new

        @pl.when(cj == nblk_c - 1)
        def _():
            ce = jnp.where(row_valid(i),
                           m_scr[...] + jnp.log(l_scr[...]) - t_scr[...], 0.0)
            finalize(ce, out_ref)

    return kernel


def softmax_hard_mining_loss(logits, targets, *, delta=DELTA,
                             max_tile_rows=None, max_block_classes=None):
    """logits: (N, C) float32/bfloat16; targets: (N,) integer class indices."""
    n, c = logits.shape
    itemsize = jnp.dtype(logits.dtype).itemsize
    vmem_limit = _vmem_limit_bytes()
    tile_n, c_tile = _pick_tiles(n, c, itemsize, vmem_limit,
                                 max_tile_rows, max_block_classes)
    nblk_c = pl.cdiv(c, c_tile)

    # Transposed, lane-dense layout: rows on the 128-lane axis, classes on the
    # sublane axis.  One extra XLA layout pass over the (N, C) logits buys a
    # fully lane-dense kernel for small C and removes all VMEM lane padding.
    xt = logits.T                                     # (C, N), caller dtype
    tg = targets.astype(jnp.int32).reshape(1, n)      # lane-dense target row
    if n < tile_n:                                    # tiny batch: pad to one tile
        pad = tile_n - n
        xt = jnp.pad(xt, ((0, 0), (0, pad)))
        tg = jnp.pad(tg, ((0, 0), (0, pad)))
    rows = xt.shape[1]
    nblk_r = pl.cdiv(rows, tile_n)                    # partial last tile masked in-kernel

    kernel = _make_kernel(n, c, c_tile, tile_n, nblk_c, float(delta))
    scratch = ()
    if nblk_c > 1:    # online-logsumexp accumulators, only when the C axis is split
        scratch = tuple(pltpu.VMEM((1, tile_n), jnp.float32) for _ in range(3))

    cost = pl.CostEstimate(
        flops=int(8 * n * c + 40 * n),
        transcendentals=int(n * c + 6 * n),
        bytes_accessed=int(n * c * itemsize + n * 4 + nblk_r * _LANE * 4),
    )

    partials = pl.pallas_call(
        kernel,
        grid=(nblk_r, nblk_c),
        in_specs=[
            pl.BlockSpec((c_tile, tile_n), lambda i, j: (j, i)),
            pl.BlockSpec((1, tile_n), lambda i, j: (0, i)),
        ],
        out_specs=pl.BlockSpec((1, 1, _LANE), lambda i, j: (i, 0, 0)),
        out_shape=jax.ShapeDtypeStruct((nblk_r, 1, _LANE), jnp.float32),
        scratch_shapes=scratch,
        compiler_params=pltpu.CompilerParams(
            # Row tiles are independent ("parallel": megacore may shard them);
            # the class axis carries the running logsumexp ("arbitrary").
            # TODO(synk): evaluate pltpu.CORE_PARALLEL on the row axis for v7x.
            dimension_semantics=("parallel", "arbitrary"),
            vmem_limit_bytes=int(vmem_limit),
        ),
        cost_estimate=cost,
    )(xt, tg)

    # mean with the true N (masked rows contributed exactly 0)
    return jnp.sum(partials) * (1.0 / n)


def _reference(logits, targets, delta=DELTA):
    # plain-JAX reference of the PyTorch forward, for a sanity check
    lg = logits.astype(jnp.float32)
    lse = jax.scipy.special.logsumexp(lg, axis=-1)
    ce = lse - jnp.take_along_axis(lg, targets.astype(jnp.int32)[:, None], axis=-1)[:, 0]
    p = jnp.clip(jnp.exp(-ce), EPS, 1.0 - EPS)
    loss = (jnp.sin(p * PI) / (p * PI)
            - jnp.exp(-delta * p) * (jnp.sin(p * delta * PI) / (p * delta * PI))) * ce * 10.0
    return loss.mean()


if __name__ == "__main__":
    key = jax.random.PRNGKey(0)
    ks = jax.random.split(key, 8)

    # 1) primary small case: batch=8, classes=16 (single dense (C, T) tile)
    N, C = 8, 16
    logits = jax.random.normal(ks[0], (N, C), dtype=jnp.float32)
    targets = jax.random.randint(ks[1], (N,), 0, C, dtype=jnp.int32)
    result = softmax_hard_mining_loss(logits, targets)
    jax.block_until_ready(result)
    ref = _reference(logits, targets)
    assert jnp.isfinite(result), "non-finite loss"
    assert jnp.allclose(result, ref, rtol=1e-4, atol=1e-5), (result, ref)

    # 2) padded single tile with k=3 lane-dense relayout (N=300 -> 384 rows)
    N2, C2 = 300, 16
    logits2 = jax.random.normal(ks[2], (N2, C2), dtype=jnp.float32)
    targets2 = jax.random.randint(ks[3], (N2,), 0, C2, dtype=jnp.int32)
    result2 = softmax_hard_mining_loss(logits2, targets2)
    jax.block_until_ready(result2)
    ref2 = _reference(logits2, targets2)
    assert jnp.isfinite(result2), "non-finite loss (padded tile)"
    assert jnp.allclose(result2, ref2, rtol=1e-4, atol=1e-5), (result2, ref2)

    # 3) multiple pipelined row tiles with a masked partial last tile
    result3 = softmax_hard_mining_loss(logits2, targets2, max_tile_rows=128)
    jax.block_until_ready(result3)
    assert jnp.isfinite(result3), "non-finite loss (row tiled)"
    assert jnp.allclose(result3, ref2, rtol=1e-4, atol=1e-5), (result3, ref2)

    # 4) class-split path: online logsumexp over 3 class blocks (last one padded)
    N4, C4 = 260, 20
    logits4 = jax.random.normal(ks[4], (N4, C4), dtype=jnp.float32)
    targets4 = jax.random.randint(ks[5], (N4,), 0, C4, dtype=jnp.int32)
    result4 = softmax_hard_mining_loss(logits4, targets4,
                                       max_tile_rows=128, max_block_classes=8)
    jax.block_until_ready(result4)
    ref4 = _reference(logits4, targets4)
    assert jnp.isfinite(result4), "non-finite loss (class split)"
    assert jnp.allclose(result4, ref4, rtol=1e-4, atol=1e-5), (result4, ref4)

    print("KERNEL_OK")
</pallas_src>

<mosaic_0001>
module attributes {stable_mosaic.version = 11 : i64} {
  func.func @kernel(%arg0: i32, %arg1: i32, %arg2: memref<16x128xf32, #tpu.memory_space<vmem>>, %arg3: memref<1x128xi32, #tpu.memory_space<vmem>>, %arg4: memref<1x1x128xf32, #tpu.memory_space<vmem>>) attributes {dimension_semantics = [#tpu.dimension_semantics<parallel>, #tpu.dimension_semantics<arbitrary>], iteration_bounds = array<i64: 1, 1>, scalar_prefetch = 0 : i64, scratch_operands = 0 : i64, tpu.core_type = #tpu.core_type<tc>, window_params = [{transform_indices = @transform_0, window_bounds = array<i64: 16, 128>}, {transform_indices = @transform_1, window_bounds = array<i64: 1, 128>}, {transform_indices = @transform_2, window_bounds = array<i64: 1, 1, 128>}]} {
    %c0 = arith.constant 0 : index
    %c0_0 = arith.constant 0 : index
    %0 = vector.load %arg2[%c0, %c0_0] : memref<16x128xf32, #tpu.memory_space<vmem>>, vector<16x128xf32>
    %c0_1 = arith.constant 0 : index
    %c0_2 = arith.constant 0 : index
    %1 = vector.load %arg3[%c0_1, %c0_2] : memref<1x128xi32, #tpu.memory_space<vmem>>, vector<1x128xi32>
    %2 = tpu.iota {dimensions = array<i32: 0>} : vector<16x128xi32>
    %cst = arith.constant dense<0xFF800000> : vector<128xf32>
    %3 = vector.multi_reduction <maximumf>, %0, %cst [0] : vector<16x128xf32> to vector<128xf32>
    %4 = vector.shape_cast %3 : vector<128xf32> to vector<1x128xf32>
    %5 = vector.broadcast %4 : vector<1x128xf32> to vector<16x128xf32>
    %6 = arith.subf %0, %5 : vector<16x128xf32>
    %7 = math.exp %6 : vector<16x128xf32>
    %cst_3 = arith.constant dense<0.000000e+00> : vector<128xf32>
    %8 = vector.multi_reduction <add>, %7, %cst_3 [0] : vector<16x128xf32> to vector<128xf32>
    %9 = vector.shape_cast %8 : vector<128xf32> to vector<1x128xf32>
    %10 = vector.broadcast %1 : vector<1x128xi32> to vector<16x128xi32>
    %11 = arith.cmpi eq, %2, %10 : vector<16x128xi32>
    %cst_4 = arith.constant 0.000000e+00 : f32
    %12 = vector.broadcast %cst_4 : f32 to vector<16x128xf32>
    %13 = arith.select %11, %0, %12 : vector<16x128xi1>, vector<16x128xf32>
    %cst_5 = arith.constant dense<0.000000e+00> : vector<128xf32>
    %14 = vector.multi_reduction <add>, %13, %cst_5 [0] : vector<16x128xf32> to vector<128xf32>
    %15 = vector.shape_cast %14 : vector<128xf32> to vector<1x128xf32>
    %16 = tpu.iota {dimensions = array<i32: 1>} : vector<1x128xi32>
    %c128_i32 = arith.constant 128 : i32
    %17 = arith.muli %arg0, %c128_i32 : i32
    %18 = vector.broadcast %17 : i32 to vector<1x128xi32>
    %19 = arith.addi %18, %16 : vector<1x128xi32>
    %c8_i32 = arith.constant 8 : i32
    %20 = vector.broadcast %c8_i32 : i32 to vector<1x128xi32>
    %21 = arith.cmpi slt, %19, %20 : vector<1x128xi32>
    %22 = math.log %9 : vector<1x128xf32>
    %23 = arith.addf %4, %22 : vector<1x128xf32>
    %24 = arith.subf %23, %15 : vector<1x128xf32>
    %cst_6 = arith.constant 0.000000e+00 : f32
    %25 = vector.broadcast %cst_6 : f32 to vector<1x128xf32>
    %26 = arith.select %21, %24, %25 : vector<1x128xi1>, vector<1x128xf32>
    %cst_7 = arith.constant 0.000000e+00 : f32
    %27 = vector.broadcast %cst_7 : f32 to vector<1x128xf32>
    %28 = arith.subf %27, %26 : vector<1x128xf32>
    %29 = math.exp %28 : vector<1x128xf32>
    %cst_8 = arith.constant 1.000000e-10 : f32
    %cst_9 = arith.constant 1.000000e+00 : f32
    %30 = vector.broadcast %cst_8 : f32 to vector<1x128xf32>
    %31 = arith.maximumf %30, %29 : vector<1x128xf32>
    %32 = vector.broadcast %cst_9 : f32 to vector<1x128xf32>
    %33 = arith.minimumf %32, %31 : vector<1x128xf32>
    %cst_10 = arith.constant 3.14159274 : f32
    %34 = vector.broadcast %cst_10 : f32 to vector<1x128xf32>
    %35 = arith.mulf %33, %34 : vector<1x128xf32>
    %36 = math.sin %35 : vector<1x128xf32>
    %37 = arith.divf %36, %35 : vector<1x128xf32>
    %cst_11 = arith.constant 1.000000e+10 : f32
    %38 = vector.broadcast %cst_11 : f32 to vector<1x128xf32>
    %39 = arith.mulf %33, %38 : vector<1x128xf32>
    %cst_12 = arith.constant 3.14159274 : f32
    %40 = vector.broadcast %cst_12 : f32 to vector<1x128xf32>
    %41 = arith.mulf %39, %40 : vector<1x128xf32>
    %cst_13 = arith.constant 0.000000e+00 : f32
    %42 = vector.broadcast %cst_13 : f32 to vector<1x128xf32>
    %43 = arith.subf %42, %39 : vector<1x128xf32>
    %44 = math.exp %43 : vector<1x128xf32>
    %45 = math.sin %41 : vector<1x128xf32>
    %46 = tpu.reciprocal %41 {approx = true} : vector<1x128xf32> -> vector<1x128xf32>
    %47 = arith.mulf %45, %46 : vector<1x128xf32>
    %48 = arith.mulf %44, %47 : vector<1x128xf32>
    %49 = arith.subf %37, %48 : vector<1x128xf32>
    %50 = arith.mulf %49, %26 : vector<1x128xf32>
    %cst_14 = arith.constant 1.000000e+01 : f32
    %51 = vector.broadcast %cst_14 : f32 to vector<1x128xf32>
    %52 = arith.mulf %50, %51 : vector<1x128xf32>
    %cst_15 = arith.constant dense<0.000000e+00> : vector<128xf32>
    %53 = vector.multi_reduction <add>, %52, %cst_15 [0] : vector<1x128xf32> to vector<128xf32>
    %54 = vector.shape_cast %53 : vector<128xf32> to vector<1x128xf32>
    %55 = vector.shape_cast %54 : vector<1x128xf32> to vector<1x1x128xf32>
    %c0_16 = arith.constant 0 : index
    %c0_17 = arith.constant 0 : index
    %c0_18 = arith.constant 0 : index
    %56 = vector.load %arg4[%c0_16, %c0_17, %c0_18] : memref<1x1x128xf32, #tpu.memory_space<vmem>>, vector<1x1x128xf32>
    tpu.vector_store %arg4[%c0_16, %c0_17, %c0_18], %55 {strides = array<i32>} : memref<1x1x128xf32, #tpu.memory_space<vmem>>, vector<1x1x128xf32>,
    return
  }
  func.func @transform_0(%arg0: i32, %arg1: i32) -> (i32, i32) {
    %c0_i32 = arith.constant 0 : i32
    return %arg1, %arg0 : i32, i32
  }
  func.func @transform_1(%arg0: i32, %arg1: i32) -> (i32, i32) {
    %c0_i32 = arith.constant 0 : i32
    %c0_i32_0 = arith.constant 0 : i32
    return %c0_i32, %arg0 : i32, i32
  }
  func.func @transform_2(%arg0: i32, %arg1: i32) -> (i32, i32, i32) {
    %c0_i32 = arith.constant 0 : i32
    %c0_i32_0 = arith.constant 0 : i32
    %c0_i32_1 = arith.constant 0 : i32
    return %arg0, %c0_i32, %c0_i32_0 : i32, i32, i32
  }
}

</mosaic_0001>

<bundles_post_ra>
// kernel: tpu_custom_call.1
= control target key start
LH: loop header
LB: loop body
LE: loop exit
PB: predicated region body
PF: predicated region fallthrough
CT: control target
= control target key end

     0   :  { %7 = vsyncpa [#allocation3], 0  ;;  %s547_s0 = inlined_call_operand.hbm [shape: f32[16,128], index: 0, kind: input, shape index: {}]   ;;  %s548_s1 = inlined_call_operand.vmem [shape: s32[1,128], index: 1, kind: input, shape index: {}]   ;;  %s549_s2 = inlined_call_operand.hbm [shape: f32[1,1,128], index: 2, kind: output, shape index: {}]  }
   0x1   :  { %8 = vsyncpa [#allocation4], 0  ;;  %s415_s9 = smov [#allocation2]  }
   0x2   :  { %s14_s10 = sshll.u32 %s415_s9, 4  ;;  %s15_s10 = int_to_ptr.vmem [resolvable:$true] %s14_s10 }
   0x3   :  { %s379_s11 = scalar_lea.vmem %s15_s10, 256  ;;  %p384_p1 = scmp.lt.s32.totalorder %s15_s10, %s15_s10 }
   0x4   :  { %p380_p0 = scmp.ne.s32.totalorder %s15_s10, %s379_s11  ;;  %p385_p2 = scmp.lt.s32.totalorder %s379_s11, %s379_s11 }
   0x6   :  { %p386_p3 = por %p385_p2, %p384_p1 }
   0x8   :  { %p387_p4 = pnand %p386_p3, %p380_p0 }
   0xa   :  { %390 = shalt.err (!%p387_p4)
}
   0xb   :  { %s416_s12 = smov 128   ;;  %s417_s13 = smov 8  }
   0xc   :  { %20 = dma.hbm_to_vmem [thread:$0]  %s547_s0, 256, %s15_s10, [#allocation3], %s416_s12, %s416_s12, %s417_s13  }
   0xd   :  { %411 = dma.done.wait [#allocation3], 256  }
   0xe   :  { %412 = vsyncadd [#allocation3], 4294967040  ;;  %v26_v0 = vld [vmem:[#allocation2] sm:$0xff]  ;;  %v27_v1 = vld [vmem:[#allocation2 + $0x8] sm:$0xff]  ;;  %v29_v13 = vlaneseq }
   0xf   :  { %v32_v2 = vmax.f32 %v26_v0, %v27_v1  ;;  %v322_v16 = vld [vmem:[%s548_s1] ss:$0 sm:$0xff]  ;;  %s424_s1 = smov [#allocation5]  }
  0x10   :  { %v30_v14 = vshrl.u32 %v29_v13, 7  ;;  %v68_v35 = vand.u32 127, %v29_v13  ;;  %s313_s17 = sshll.u32 %s424_s1, 4  ;;  %s314_s17 = int_to_ptr.vmem [resolvable:$true] %s313_s17 }
  0x11   :  { %v33_v3 = vrot.slane %v32_v2, 4  ;;  %s391_s18 = scalar_lea.vmem %s314_s17, 16  ;;  %s395_s19 = scalar_lea.vmem %s314_s17, 32 }
  0x12   :  { %v31_v15 = vadd.s32 8, %v30_v14  ;;  %vm56_vm0 = vcmp.eq.s32.totalorder %v30_v14, %v322_v16  ;;  %vm72_vm2 = vcmp.lt.s32.totalorder %v68_v35, 8  ;;  %p392_p5 = scmp.ne.s32.totalorder %s314_s17, %s391_s18  ;;  %p396_p6 = scmp.lt.s32.totalorder %s314_s17, %s314_s17 }
  0x13   :  { %v34_v4 = vmax.f32 %v32_v2, %v33_v3  ;;  %v58_v20 = vsel %vm56_vm0, %v26_v0, 0.0  ;;  %p397_p7 = scmp.lt.s32.totalorder %s395_s19, %s391_s18 }
  0x14   :  { %vm57_vm1 = vcmp.eq.s32.totalorder %v31_v15, %v322_v16 }
  0x15   :  { %v35_v5 = vrot.slane %v34_v4, 2  ;;  %v59_v21 = vsel %vm57_vm1, %v27_v1, 0.0  ;;  %p398_p8 = por %p397_p7, %p396_p6 }
  0x16   :  { %v60_v24 = vadd.f32 %v59_v21, %v58_v20 }
  0x17   :  { %v36_v6 = vmax.f32 %v34_v4, %v35_v5  ;;  %v418_v4 = vmov 683565275   ;;  %p399_p9 = pnand %p398_p8, %p392_p5 }
  0x18   :  { %v61_v27 = vrot.slane %v60_v24, 4 }
  0x19   :  { %v37_v7 = vrot.slane %v36_v6, 1 }
  0x1a   :  { %v62_v30 = vadd.f32 %v61_v27, %v60_v24 }
  0x1b   :  { %v38_v8 = vmax.f32 %v36_v6, %v37_v7  ;;  %v419_v6 = vmov 2475754826  }
  0x1c   :  { %v63_v31 = vrot.slane %v62_v30, 2 }
  0x1d   :  { %v39_v9 = vsub.f32 %v26_v0, %v38_v8  ;;  %v40_v10 = vsub.f32 %v27_v1, %v38_v8 }
  0x1e   :  { %v64_v32 = vadd.f32 %v63_v31, %v62_v30 }
  0x1f   :  { %v41_v11 = vmul.f32 1.442695, %v39_v9  ;;  %v43_v12 = vmul.f32 1.442695, %v40_v10  ;;  %v421_v10 = vmov 2102212464  }
  0x20   :  { %v65_v33 = vrot.slane %v64_v32, 1 }
  0x21   :  { %349 = vpow2.f32 %v41_v11 }
  0x22   :  { %351 = vpow2.f32 %v43_v12  ;;  %v66_v36 = vadd.f32 %v65_v33, %v64_v32  ;;  %v422_v12 = vmov 920167782  }
  0x2e   :  { %v350_v17 = vpop.eup %349 }
  0x2f   :  { %v352_v18 = vpop.eup %351 }
  0x30   :  { %v45_v19 = vadd.f32 %v352_v18, %v350_v17 }
  0x32   :  { %v46_v22 = vrot.slane %v45_v19, 4 }
  0x34   :  { %v47_v23 = vadd.f32 %v46_v22, %v45_v19  ;;  %v423_v19 = vmov 1326507024  }
  0x36   :  { %v48_v25 = vrot.slane %v47_v23, 2 }
  0x38   :  { %v49_v26 = vadd.f32 %v48_v25, %v47_v23 }
  0x3a   :  { %v50_v28 = vrot.slane %v49_v26, 1 }
  0x3c   :  { %v51_v29 = vadd.f32 %v50_v28, %v49_v26 }
  0x3e   :  { %353 = vlog2.f32 %v51_v29 }
  0x4b   :  { %v354_v34 = vpop.eup %353 }
  0x4c   :  { %v74_v37 = vmul.f32 0.6931472, %v354_v34 }
  0x4e   :  { %v75_v38 = vadd.f32 %v74_v37, %v38_v8  ;;  %v420_v8 = vmov 2131351028  }
  0x50   :  { %v76_v39 = vsub.f32 %v75_v38, %v66_v36 }
  0x52   :  { %v446_v40 = vsel %vm72_vm2, %v76_v39, 0.0 }
  0x53   :  { %v78_v41 = vsub.f32 0.0, %v446_v40 }
  0x55   :  { %v79_v42 = vmul.f32 1.442695, %v78_v41 }
  0x57   :  { %355 = vpow2.f32 %v79_v42 }
  0x64   :  { %v356_v43 = vpop.eup %355 }
  0x65   :  { %v81_v44 = vmax.f32 %v356_v43, 1e-10 }
  0x67   :  { %v82_v45 = vmin.f32 %v81_v44, 1.0 }
  0x69   :  { %v449_v46 = vmul.f32 3.1415927, %v82_v45  ;;  %v451_v47 = vmul.f32 1e+10, %v82_v45 }
  0x6b   :  { %v84_v48 = vand.u32 2147483647, %v449_v46  ;;  %v87_v49 = vand.u32 2139095040, %v449_v46  ;;  %v456_v50 = vmul.f32 3.1415927, %v451_v47  ;;  %vm86_vm1 = vcmp.lt.s32.totalorder %v449_v46, 0 }
  0x6d   :  { %v88_v51 = vshrl.u32 %v87_v49, 23  ;;  %v91_v52 = vand.u32 8388607, %v84_v48  ;;  %v195_v53 = vand.u32 2147483647, %v456_v50  ;;  %v198_v54 = vand.u32 2139095040, %v456_v50 }
  0x6e   :  { %vm513_vm2 = vcmp.le.f32.partialorder %v84_v48, 0.7853982 }
  0x6f   :  { %v323_v55 = vadd.s32 4294967169, %v88_v51  ;;  %v199_v56 = vshrl.u32 %v198_v54, 23  ;;  %v92_v58 = vor.u32 8388608, %v91_v52  ;;  %v464_v60 = vand.u32 8388607, %v195_v53 }
  0x71   :  { %v94_v57 = vadd.s32 1, %v323_v55  ;;  %v327_v59 = vadd.s32 4294967169, %v199_v56  ;;  %v466_v1 = vshll.u32 %v92_v58, 8  ;;  %v203_v2 = vor.u32 8388608, %v464_v60 }
  0x73   :  { %vm95_vm3 = vcmp.gt.s32.totalorder %v94_v57, 0  ;;  %v205_v62 = vadd.s32 1, %v327_v59 }
  0x74   :  { %v96_v61 = vsel %vm95_vm3, %v94_v57, 0  ;;  %vm197_vm3 = vcmp.lt.s32.totalorder %v456_v50, 0 }
  0x75   :  { %v97_v63 = vshrl.u32 %v96_v61, 5  ;;  %v98_v0 = vand.u32 31, %v96_v61  ;;  %vm206_vm4 = vcmp.gt.s32.totalorder %v205_v62, 0 }
  0x76   :  { %v207_v24 = vsel %vm206_vm4, %v205_v62, 0  ;;  %vm527_vm4 = vcmp.le.f32.partialorder %v195_v53, 0.7853982 }
  0x77   :  { %v99_v3 = vsub.s32 32, %v98_v0  ;;  %v101_v5 = vshll.u32 %v418_v4, %v98_v0  ;;  %v104_v7 = vshll.u32 %v419_v6, %v98_v0  ;;  %v107_v9 = vshll.u32 %v420_v8, %v98_v0 }
  0x78   :  { %v110_v11 = vshll.u32 %v421_v10, %v98_v0  ;;  %v113_v13 = vshll.u32 %v422_v12, %v98_v0  ;;  %vm116_vm5 = vcmp.lt.s32.totalorder %v97_v63, 1  ;;  %vm117_vm6 = vcmp.lt.s32.totalorder %v97_v63, 2 }
  0x79   :  { %v100_v14 = vshrl.u32 %v418_v4, %v99_v3  ;;  %v102_v15 = vshrl.u32 %v419_v6, %v99_v3  ;;  %v105_v16 = vshrl.u32 %v420_v8, %v99_v3  ;;  %v108_v17 = vshrl.u32 %v421_v10, %v99_v3 }
  0x7a   :  { %v111_v18 = vshrl.u32 %v422_v12, %v99_v3  ;;  %v114_v20 = vshrl.u32 %v423_v19, %v99_v3  ;;  %vm118_vm7 = vcmp.lt.s32.totalorder %v97_v63, 3  ;;  %vm119_vm8 = vcmp.lt.s32.totalorder %v97_v63, 4 }
  0x7b   :  { %v103_v21 = vor.u32 %v102_v15, %v101_v5  ;;  %v106_v22 = vor.u32 %v105_v16, %v104_v7  ;;  %v109_v23 = vor.u32 %v108_v17, %v107_v9  ;;  %v208_v27 = vshrl.u32 %v207_v24, 5 }
  0x7c   :  { %v112_v25 = vor.u32 %v111_v18, %v110_v11  ;;  %v115_v26 = vor.u32 %v114_v20, %v113_v13  ;;  %v209_v28 = vand.u32 31, %v207_v24 }
  0x7d   :  { %v120_v29 = vsel %vm116_vm5, %v100_v14, %v103_v21  ;;  %v121_v30 = vsel %vm119_vm8, %v109_v23, 2102212464  ;;  %v124_v31 = vsel %vm116_vm5, %v103_v21, %v106_v22  ;;  %v128_v32 = vsel %vm116_vm5, %v106_v22, %v109_v23 }
  0x7e   :  { %v122_v33 = vsel %vm118_vm7, %v106_v22, %v121_v30  ;;  %v125_v34 = vsel %vm119_vm8, %v112_v25, 920167782  ;;  %v129_v35 = vsel %vm119_vm8, %v115_v26, 1326507024  ;;  %v210_v36 = vsub.s32 32, %v209_v28 }
  0x7f   :  { %v123_v37 = vsel %vm117_vm6, %v120_v29, %v122_v33  ;;  %v126_v38 = vsel %vm118_vm7, %v109_v23, %v125_v34  ;;  %v130_v39 = vsel %vm118_vm7, %v112_v25, %v129_v35  ;;  %v212_v41 = vshll.u32 %v418_v4, %v209_v28 }
  0x80   :  { %v127_v42 = vsel %vm117_vm6, %v124_v31, %v126_v38  ;;  %v131_v43 = vsel %vm117_vm6, %v128_v32, %v130_v39  ;;  %v139_v44 = vmul.u32 %v466_v1, %v123_v37  ;;  %v211_v45 = vshrl.u32 %v418_v4, %v210_v36 }
  0x81   :  { %v481_v49 = vmul.u32.u64.low %v466_v1, %v131_v43  ;;  %v482_v51 = vmul.u32.u64.high %v466_v1, %v131_v43, %v481_v49  ;;  %v485_v52 = vmul.u32.u64.low %v466_v1, %v127_v42  ;;  %v486_v54 = vmul.u32.u64.high %v466_v1, %v127_v42, %v485_v52 }
  0x82   :  { %v213_v55 = vshrl.u32 %v419_v6, %v210_v36  ;;  %v215_v56 = vshll.u32 %v419_v6, %v209_v28  ;;  %v216_v57 = vshrl.u32 %v420_v8, %v210_v36  ;;  %v218_v58 = vshll.u32 %v420_v8, %v209_v28 }
  0x83   :  { %v219_v59 = vshrl.u32 %v421_v10, %v210_v36  ;;  %v221_v61 = vshll.u32 %v421_v10, %v209_v28  ;;  %v222_v62 = vshrl.u32 %v422_v12, %v210_v36  ;;  %v224_v63 = vshll.u32 %v422_v12, %v209_v28 }
  0x84   :  { %v214_v0 = vor.u32 %v213_v55, %v212_v41  ;;  %v217_v3 = vor.u32 %v216_v57, %v215_v56  ;;  %v225_v5 = vshrl.u32 %v423_v19, %v210_v36  ;;  %vm227_vm9 = vcmp.lt.s32.totalorder %v208_v27, 1 }
  0x85   :  { %vm141_vm10 = vc.u32 %v482_v51, %v485_v52  ;;  %v142_v4 = vadd.s32 1, %v486_v54  ;;  %v220_v7 = vor.u32 %v219_v59, %v218_v58  ;;  %v243_v1 = vshll.u32 %v203_v2, 8 }
  0x86   :  { %v223_v9 = vor.u32 %v222_v62, %v221_v61  ;;  %v226_v6 = vor.u32 %v225_v5, %v224_v63  ;;  %vm228_vm11 = vcmp.lt.s32.totalorder %v208_v27, 2  ;;  %vm229_vm12 = vcmp.lt.s32.totalorder %v208_v27, 3 }
  0x87   :  { %v143_v8 = vsel %vm141_vm10, %v142_v4, %v486_v54  ;;  %vm230_vm13 = vcmp.lt.s32.totalorder %v208_v27, 4  ;;  %v231_v10 = vsel %vm227_vm9, %v211_v45, %v214_v0  ;;  %v235_v11 = vsel %vm227_vm9, %v214_v0, %v217_v3 }
  0x88   :  { %v144_v12 = vadd.s32 %v143_v8, %v139_v44  ;;  %v232_v13 = vsel %vm230_vm13, %v220_v7, 2102212464  ;;  %v236_v14 = vsel %vm230_vm13, %v223_v9, 920167782  ;;  %v239_v15 = vsel %vm227_vm9, %v217_v3, %v220_v7 }
  0x89   :  { %v233_v16 = vsel %vm229_vm12, %v217_v3, %v232_v13  ;;  %v237_v17 = vsel %vm229_vm12, %v220_v7, %v236_v14  ;;  %v240_v60 = vsel %vm230_vm13, %v226_v6, 1326507024  ;;  %v140_v41 = vadd.s32 %v485_v52, %v482_v51 }
  0x8a   :  { %v145_v2 = vadd.s32 536870912, %v144_v12  ;;  %v238_v18 = vsel %vm228_vm11, %v235_v11, %v237_v17  ;;  %v241_v19 = vsel %vm229_vm12, %v223_v9, %v240_v60  ;;  %v234_v20 = vsel %vm228_vm11, %v231_v10, %v233_v16 }
  0x8b   :  { %v242_v21 = vsel %vm228_vm11, %v239_v15, %v241_v19  ;;  %v499_v22 = vmul.u32.u64.low %v243_v1, %v238_v18  ;;  %v500_v23 = vmul.u32.u64.high %v243_v1, %v238_v18, %v499_v22  ;;  %v250_v29 = vmul.u32 %v243_v1, %v234_v20 }
  0x8c   :  { %v146_v24 = vshrl.u32 %v145_v2, 30  ;;  %v502_v25 = vmul.u32.u64.low %v243_v1, %v242_v21  ;;  %v503_v26 = vmul.u32.u64.high %v243_v1, %v242_v21, %v502_v25  ;;  %vm176_vm9 = vweird.f32 %v449_v46 }
  0x8d   :  { %v253_v30 = vadd.s32 1, %v500_v23  ;;  %vm287_vm12 = vweird.f32 %v456_v50 }
  0x8e   :  { %v147_v28 = vshll.u32 %v146_v24, 30  ;;  %vm252_vm14 = vc.u32 %v503_v26, %v499_v22  ;;  %v251_v5 = vadd.s32 %v499_v22, %v503_v26  ;;  %v170_v15 = vsub.s32 4, %v146_v24 }
  0x8f   :  { %v254_v32 = vsel %vm252_vm14, %v253_v30, %v500_v23  ;;  %v192_v22 = vsub.f32 0.0, %v451_v47 }
  0x90   :  { %v148_v31 = vsub.s32 %v144_v12, %v147_v28  ;;  %v255_v34 = vadd.s32 %v254_v32, %v250_v29  ;;  %v171_v60 = vsel %vm86_vm1, %v170_v15, %v146_v24 }
  0x91   :  { %v173_v21 = vsel %vm513_vm2, 0, %v171_v60  ;;  %v193_v28 = vmul.f32 1.442695, %v192_v22 }
  0x92   :  { %v150_v33 = vsub.s32 0, %v148_v31  ;;  %v256_v35 = vadd.s32 536870912, %v255_v34  ;;  %v177_v26 = vadd.s32 3, %v173_v21 }
  0x94   :  { %v324_v27 = vmin.u32 %v150_v33, %v148_v31  ;;  %v257_v37 = vshrl.u32 %v256_v35, 30 }
  0x96   :  { %v152_v36 = vclz %v324_v27  ;;  %v258_v39 = vshll.u32 %v257_v37, 30  ;;  %v281_v18 = vsub.s32 4, %v257_v37 }
  0x98   :  { %v325_v38 = vadd.s32 4294967294, %v152_v36  ;;  %v259_v43 = vsub.s32 %v255_v34, %v258_v39  ;;  %v282_v25 = vsel %vm197_vm3, %v281_v18, %v257_v37 }
  0x99   :  { %v284_v53 = vsel %vm527_vm4, 0, %v282_v25 }
  0x9a   :  { %vm326_vm15 = vcmp.lt.s32.totalorder %v325_v38, 0  ;;  %v261_v54 = vsub.s32 0, %v259_v43  ;;  %v288_v47 = vadd.s32 3, %v284_v53 }
  0x9b   :  { %v155_v42 = vsel %vm326_vm15, 0, %v325_v38 }
  0x9c   :  { %v156_v44 = vsub.s32 32, %v155_v42  ;;  %v157_v45 = vshll.u32 %v148_v31, %v155_v42  ;;  %v160_v49 = vsub.s32 4294967266, %v155_v42  ;;  %v328_v57 = vmin.u32 %v261_v54, %v259_v43 }
  0x9d   :  { %v178_v31 = vand.u32 3, %v177_v26  ;;  %v289_v34 = vand.u32 3, %v288_v47 }
  0x9e   :  { %v158_v55 = vshrl.u32 %v140_v41, %v156_v44  ;;  %v161_v56 = vadd.s32 127, %v160_v49  ;;  %v263_v61 = vclz %v328_v57 }
  0x9f   :  { %vm180_vm5 = vcmp.eq.s32.totalorder %v178_v31, 0  ;;  %vm183_vm6 = vcmp.eq.s32.totalorder %v178_v31, 2  ;;  %vm179_vm7 = vcmp.lt.s32.totalorder %v178_v31, 2  ;;  %vm294_vm8 = vcmp.eq.s32.totalorder %v289_v34, 2 }
  0xa0   :  { %v159_v58 = vor.u32 %v158_v55, %v157_v45  ;;  %v162_v59 = vshll.u32 %v161_v56, 23  ;;  %v329_v0 = vadd.s32 4294967294, %v263_v61  ;;  %vm291_vm10 = vcmp.eq.s32.totalorder %v289_v34, 0 }
  0xa1   :  { %vm290_vm11 = vcmp.lt.s32.totalorder %v289_v34, 2 }
  0xa2   :  { %v163_v62 = vor.u32 4788187, %v162_v59  ;;  %v166_v63 = vcvt.s32.f32 %v159_v58  ;;  %vm330_vm0 = vcmp.lt.s32.totalorder %v329_v0, 0 }
  0xa3   :  { %v266_v52 = vsel %vm330_vm0, 0, %v329_v0 }
  0xa4   :  { %v164_v3 = vand.u32 2147483647, %v163_v62  ;;  %v267_v4 = vsub.s32 32, %v266_v52  ;;  %v268_v7 = vshll.u32 %v259_v43, %v266_v52  ;;  %v271_v1 = vsub.s32 4294967266, %v266_v52 }
  0xa6   :  { %v167_v51 = vmul.f32 %v166_v63, %v164_v3  ;;  %v269_v8 = vshrl.u32 %v251_v5, %v267_v4  ;;  %v272_v10 = vadd.s32 127, %v271_v1 }
  0xa8   :  { %v168_v6 = vxor.u32 2147483648, %v167_v51  ;;  %v270_v13 = vor.u32 %v269_v8, %v268_v7  ;;  %v273_v14 = vshll.u32 %v272_v10, 23 }
  0xaa   :  { %v169_v11 = vsel %vm86_vm1, %v168_v6, %v167_v51  ;;  %v274_v16 = vor.u32 4788187, %v273_v14  ;;  %v277_v17 = vcvt.s32.f32 %v270_v13 }
  0xab   :  { %v172_v12 = vsel %vm513_vm2, %v449_v46, %v169_v11 }
  0xac   :  { %357 = vcosq.f32 %v172_v12  ;;  %v275_v48 = vand.u32 2147483647, %v274_v16 }
  0xad   :  { %359 = vsinq.f32 %v172_v12 }
  0xae   :  { %v278_v2 = vmul.f32 %v277_v17, %v275_v48 }
  0xb0   :  { %v279_v20 = vxor.u32 2147483648, %v278_v2 }
  0xb2   :  { %v280_v23 = vsel %vm197_vm3, %v279_v20, %v278_v2 }
  0xb3   :  { %v283_v24 = vsel %vm527_vm4, %v456_v50, %v280_v23 }
  0xb4   :  { %361 = vcosq.f32 %v283_v24 }
  0xb5   :  { %363 = vsinq.f32 %v283_v24 }
  0xb6   :  { %365 = vrcp.f32 %v449_v46 }
  0xb7   :  { %367 = vrcp.f32 %v456_v50 }
  0xb8   :  { %369 = vpow2.f32 %v193_v28 }
  0xb9   :  { %v358_v29 = vpop.eup %357 }
  0xba   :  { %v360_v30 = vpop.eup %359  ;;  %v184_v33 = vxor.u32 2147483648, %v358_v29 }
  0xbb   :  { %v181_v32 = vxor.u32 2147483648, %v360_v30 }
  0xbc   :  { %v185_v35 = vsel %vm183_vm6, %v184_v33, %v360_v30 }
  0xbd   :  { %v182_v27 = vsel %vm180_vm5, %v358_v29, %v181_v32 }
  0xbe   :  { %v186_v38 = vsel %vm179_vm7, %v182_v27, %v185_v35 }
  0xbf   :  { %v187_v45 = vsel %vm176_vm9, nan, %v186_v38 }
  0xc1   :  { %v362_v36 = vpop.eup %361 }
  0xc2   :  { %v364_v37 = vpop.eup %363  ;;  %v295_v39 = vxor.u32 2147483648, %v362_v36 }
  0xc3   :  { %v292_v41 = vxor.u32 2147483648, %v364_v37  ;;  %v366_v42 = vpop.eup %365 }
  0xc4   :  { %v296_v43 = vsel %vm294_vm8, %v295_v39, %v364_v37  ;;  %v368_v44 = vpop.eup %367  ;;  %v189_v57 = vmul.f32 %v366_v42, %v187_v45 }
  0xc5   :  { %v293_v49 = vsel %vm291_vm10, %v362_v36, %v292_v41  ;;  %v370_v55 = vpop.eup %369 }
  0xc6   :  { %v297_v54 = vsel %vm290_vm11, %v293_v49, %v296_v43 }
  0xc7   :  { %v298_v56 = vsel %vm287_vm12, nan, %v297_v54 }
  0xc8   :  { %v300_v58 = vmul.f32 %v368_v44, %v298_v56 }
  0xca   :  { %v301_v59 = vmul.f32 %v370_v55, %v300_v58 }
  0xcc   :  { %v302_v61 = vsub.f32 %v189_v57, %v301_v59 }
  0xce   :  { %v303_v46 = vmul.f32 %v302_v61, %v446_v40 }
  0xd0   :  { %v304_v62 = vmul.f32 10.0, %v303_v46 }
  0xd2   :  { %306 = vst [vmem:[#allocation5] sm:$0x1] %v304_v62 }
  0xd3   :  { %402 = shalt.err (!%p399_p9)
}
  0xd4   :  { %316 = dma.vmem_to_hbm [thread:$0]  %s314_s17, 16, %s549_s2, [#allocation4]  }
  0xd5   :  { %413 = dma.done.wait [#allocation4], 16  }
  0xd6   :  { %414 = vsyncadd [#allocation4], 4294967280 }
  0xd7   :  { %320 = vsyncpa [#allocation3], 1 }
  0xd8   :  { %321 = vsyncpa [#allocation4], 1 }

</bundles_post_ra>
